<compile_context>
chip_gen: v6e
topology: v6e:2x2x1
jax: 0.10.0
libtpu: 0.0.40
codegen_flags: <defaults>
</compile_context>

<pallas_src>
import functools

import jax
import jax.numpy as jnp
import numpy as np
from jax import lax
from jax.experimental import pallas as pl
from jax.experimental.pallas import tpu as pltpu

_STATS_ROWS = 8  # rows = [count, sum_acc, sum_conf, 0, 0, 0, 0, 0] (padded for MXU)


def _round_up(x, m):
    return ((x + m - 1) // m) * m


def _num_tensorcores_per_chip():
    """Best-effort TensorCore count: 2 on v7x, else 1 (v5e/v6e, or on failure)."""
    try:
        kind = jax.devices()[0].device_kind.lower()
        if "v7" in kind:
            return 2
    except Exception:
        pass
    return 1


def _ece_stats_kernel(logits_ref, labels_ref, lo_ref, d_ref, out_ref, stacked_ref,
                      *, tile_n, steps_per_split, n_rows):
    """Accumulate per-bin (count, sum_acc, sum_conf) for one (C, TILE_N) tile.

    logits_ref  : (C, TILE_N)         -- classes on sublanes, rows on lanes
    labels_ref  : (1, TILE_N) i32
    lo_ref      : (NB_PAD, 1) f32     -- lower bin bounds; lo[n_bins] = 1.0,
                                         padded rows = 2.0 (never match)
    d_ref       : (NB_PAD, NB_PAD) f32 -- cum -> per-bin difference matrix
    out_ref     : (1, 8, NB_PAD) f32  -- resident accumulator for this split
    stacked_ref : (8, TILE_N) f32 scratch; row0=1, row1=acc, row2=conf
    """
    p = pl.program_id(0)          # parallel split (2nd TensorCore on v7x)
    i = pl.program_id(1)          # reduction step along N

    @pl.when(i == 0)
    def _():
        r = lax.broadcasted_iota(jnp.int32, stacked_ref.shape, 0)
        stacked_ref[...] = jnp.where(r == 0, 1.0, 0.0).astype(jnp.float32)
        out_ref[...] = jnp.zeros_like(out_ref)

    logits = logits_ref[...].astype(jnp.float32)    # (C, TILE_N)
    labels = labels_ref[...]                        # (1, TILE_N)
    c = logits.shape[0]

    # "softmax" = (exp(x)+1)/sum(exp(x)+1) is monotone per row, so only the row
    # max and row sum of exp are needed (no max-subtraction: matches reference).
    e = jnp.exp(logits)                                            # (C, TILE_N)
    row_sum = jnp.sum(e, axis=0, keepdims=True) + jnp.float32(c)   # sum(exp+1)
    e_max = jnp.max(e, axis=0, keepdims=True)                      # (1, TILE_N)
    conf = (e_max + 1.0) / row_sum                                 # (1, TILE_N)

    # predictions = first index of the row max (ties resolved to smallest index)
    cls_iota = lax.broadcasted_iota(jnp.int32, logits.shape, 0)
    pred = jnp.min(jnp.where(e == e_max, cls_iota, c), axis=0, keepdims=True)
    acc = (pred == labels).astype(jnp.float32)                     # (1, TILE_N)

    # Ragged edge + overflow hygiene: lanes past n_rows hold garbage (exp can be
    # Inf/NaN), and overflowed valid lanes can yield conf = NaN.  Zero those
    # BEFORE the MXU / binning (lo_0 = 0, so conf == 0 matches no bin; NaN conf
    # matches no bin in the reference either).
    row0 = (p * steps_per_split + i) * tile_n
    lane = lax.broadcasted_iota(jnp.int32, (1, tile_n), 1)
    valid = (row0 + lane) < n_rows                                 # (1, TILE_N)
    conf = jnp.where(jnp.logical_and(valid, conf > 0.0), conf, 0.0)

    # Cumulative bin indicator g_k = (conf > lo_k): one compare + one select.
    g = jnp.where(conf > lo_ref[...], 1.0, 0.0).astype(jnp.float32)  # (NB_PAD, TILE_N)

    # Stack [1, acc, conf] via the persistent scratch (row 0 / 3..7 set at i==0).
    stacked_ref[pl.ds(1, 1), :] = acc
    stacked_ref[pl.ds(2, 1), :] = conf

    # One skinny MXU matmul reduces all bins at once, then a tiny constant
    # matmul turns cumulative stats into per-bin stats (cum_k - cum_{k+1}).
    partial_cum = lax.dot_general(stacked_ref[...], g,
                                  dimension_numbers=(((1,), (1,)), ((), ())),
                                  preferred_element_type=jnp.float32)  # (8, NB_PAD)
    partial = lax.dot_general(partial_cum, d_ref[...],
                              dimension_numbers=(((1,), (0,)), ((), ())),
                              preferred_element_type=jnp.float32)      # (8, NB_PAD)
    out_ref[...] += partial[None]


def ece_loss(logits, labels, n_bins=15, *, tile_n=None, num_splits=None):
    """Pallas implementation of _ECELoss.forward. logits: (N, C), labels: (N,)."""
    n, c = logits.shape
    nb_pad = _round_up(n_bins + 1, 8)   # >= n_bins+1 so lo[n_bins] = 1.0 exists

    # Same boundaries as torch.linspace(0, 1, n_bins + 1) in float32.
    bounds = np.linspace(0.0, 1.0, n_bins + 1, dtype=np.float32)
    lo = np.full((nb_pad, 1), 2.0, dtype=np.float32)   # padded bins never match
    lo[: n_bins + 1, 0] = bounds                       # lo[n_bins] = 1.0 = last hi

    # cum -> per-bin difference matrix: column k (real bins) = e_k - e_{k+1}.
    dmat = np.zeros((nb_pad, nb_pad), dtype=np.float32)
    for k in range(n_bins):
        dmat[k, k] = 1.0
        dmat[k + 1, k] = -1.0

    # Tile sizing: ~4 MiB of logits per pipeline buffer, whole per-step live set
    # kept under ~24 MiB (v7x-safe), clamped to the (128-rounded) problem size.
    elem_bytes = jnp.dtype(logits.dtype).itemsize
    if tile_n is None:
        tile_n = (4 * 1024 * 1024) // max(1, elem_bytes * c)
        live_per_row = 2 * elem_bytes * c + 4 * (2 * c + nb_pad + _STATS_ROWS + 4)
        tile_n = min(tile_n, (24 * 1024 * 1024) // live_per_row)
    tile_n = min(tile_n, _round_up(n, 128))
    tile_n = max(128, (tile_n // 128) * 128)

    if num_splits is None:
        num_splits = _num_tensorcores_per_chip()
    total_steps = pl.cdiv(n, tile_n)
    # Make sure every split gets at least one tile of real rows (v7x small-N).
    while num_splits > 1 and total_steps < num_splits and tile_n > 128:
        tile_n = max(128, ((tile_n // 2) // 128) * 128)
        total_steps = pl.cdiv(n, tile_n)
    if total_steps < num_splits:
        num_splits = 1
    steps_per_split = pl.cdiv(total_steps, num_splits)
    needs_clamp = num_splits * steps_per_split > total_steps
    last_block = total_steps - 1

    def block_idx(p, i):
        g = p * steps_per_split + i
        return jnp.minimum(g, last_block) if needs_clamp else g

    # Layout plumbing only: class axis onto sublanes, rows onto lanes. No pad,
    # no dtype change (upcast happens in-kernel).
    logits_t = jnp.transpose(logits)                    # (C, N)
    labels2 = labels.astype(jnp.int32).reshape(1, n)    # (1, N)

    kernel = functools.partial(_ece_stats_kernel, tile_n=tile_n,
                               steps_per_split=steps_per_split, n_rows=n)

    stats = pl.pallas_call(
        kernel,
        out_shape=jax.ShapeDtypeStruct((num_splits, _STATS_ROWS, nb_pad), jnp.float32),
        grid=(num_splits, steps_per_split),
        in_specs=[
            pl.BlockSpec((c, tile_n), lambda p, i: (0, block_idx(p, i))),
            pl.BlockSpec((1, tile_n), lambda p, i: (0, block_idx(p, i))),
            pl.BlockSpec((nb_pad, 1), lambda p, i: (0, 0)),
            pl.BlockSpec((nb_pad, nb_pad), lambda p, i: (0, 0)),
        ],
        out_specs=pl.BlockSpec((1, _STATS_ROWS, nb_pad), lambda p, i: (p, 0, 0)),
        scratch_shapes=[pltpu.VMEM((_STATS_ROWS, tile_n), jnp.float32)],
        compiler_params=pltpu.CompilerParams(
            dimension_semantics=("parallel", "arbitrary"),
            vmem_limit_bytes=32 * 1024 * 1024),
    )(logits_t, labels2, jnp.asarray(lo), jnp.asarray(dmat))

    # Tiny epilogue: combine per-split partials, then the weighted |conf-acc|
    # sum with the original "if prop_in_bin > 0" guard as a masked select.
    totals = jnp.sum(stats, axis=0)                  # (8, NB_PAD)
    counts = totals[0, :n_bins]
    sum_acc = totals[1, :n_bins]
    sum_conf = totals[2, :n_bins]
    prop = counts / jnp.float32(n)
    safe = jnp.maximum(counts, 1.0)
    gap = jnp.abs(sum_conf / safe - sum_acc / safe) * prop
    ece = jnp.sum(jnp.where(counts > 0.0, gap, 0.0))
    return ece.reshape(1)


def ece_loss_ref(logits, labels, n_bins=15):
    """Pure-JAX reference mirroring the PyTorch code (for validation)."""
    e = jnp.exp(logits) + 1.0
    softm = e / jnp.sum(e, axis=1, keepdims=True)
    conf = jnp.max(softm, axis=1)
    pred = jnp.argmax(softm, axis=1)
    acc = (pred == labels).astype(jnp.float32)
    bounds = np.linspace(0.0, 1.0, n_bins + 1, dtype=np.float32)
    ece = jnp.zeros((1,), jnp.float32)
    for lo, hi in zip(bounds[:-1], bounds[1:]):
        in_bin = (conf > lo) & (conf <= hi)
        count = jnp.sum(in_bin.astype(jnp.float32))
        prop = count / conf.shape[0]
        acc_in = jnp.sum(jnp.where(in_bin, acc, 0.0)) / jnp.maximum(count, 1.0)
        conf_in = jnp.sum(jnp.where(in_bin, conf, 0.0)) / jnp.maximum(count, 1.0)
        ece = ece + jnp.where(count > 0, jnp.abs(conf_in - acc_in) * prop, 0.0)
    return ece


if __name__ == "__main__":
    key = jax.random.PRNGKey(0)
    k1, k2, k3, k4, k5, k6 = jax.random.split(key, 6)

    # Small, exactly-tiled single-step case.
    N, C = 128, 16
    logits = jax.random.normal(k1, (N, C), dtype=jnp.float32) * 2.0
    labels = jax.random.randint(k2, (N,), 0, C, dtype=jnp.int32)
    ece = jax.block_until_ready(ece_loss(logits, labels, n_bins=15))
    ece_expected = jax.block_until_ready(ece_loss_ref(logits, labels, n_bins=15))
    assert ece.shape == (1,)
    assert np.allclose(np.asarray(ece), np.asarray(ece_expected), atol=1e-5), (
        ece, ece_expected)

    # Ragged case (N not a multiple of 128): exercises the un-padded edge block.
    N2, C2 = 1000, 10
    logits2 = jax.random.normal(k3, (N2, C2), dtype=jnp.float32) * 3.0
    labels2 = jax.random.randint(k4, (N2,), 0, C2, dtype=jnp.int32)
    ece2 = jax.block_until_ready(ece_loss(logits2, labels2, n_bins=15))
    ece2_expected = jax.block_until_ready(ece_loss_ref(logits2, labels2, n_bins=15))
    assert np.allclose(np.asarray(ece2), np.asarray(ece2_expected), atol=1e-5), (
        ece2, ece2_expected)

    # Multi-step accumulation + explicit 2-way split with an odd number of tiles
    # (exercises the clamped, fully-masked overflow block and the ragged tail).
    N3, C3 = 2700, 8
    logits3 = jax.random.normal(k5, (N3, C3), dtype=jnp.float32) * 3.0
    labels3 = jax.random.randint(k6, (N3,), 0, C3, dtype=jnp.int32)
    ece3 = jax.block_until_ready(ece_loss(logits3, labels3, n_bins=15,
                                          tile_n=256, num_splits=2))
    ece3_expected = jax.block_until_ready(ece_loss_ref(logits3, labels3, n_bins=15))
    assert np.allclose(np.asarray(ece3), np.asarray(ece3_expected), atol=2e-5), (
        ece3, ece3_expected)

    print("KERNEL_OK")
</pallas_src>

<mosaic_0001>
module attributes {stable_mosaic.version = 11 : i64} {
  func.func @_ece_stats_kernel(%arg0: i32, %arg1: i32, %arg2: memref<16x128xf32, #tpu.memory_space<vmem>>, %arg3: memref<1x128xi32, #tpu.memory_space<vmem>>, %arg4: memref<16x1xf32, #tpu.memory_space<vmem>>, %arg5: memref<16x16xf32, #tpu.memory_space<vmem>>, %arg6: memref<1x8x16xf32, #tpu.memory_space<vmem>>, %arg7: memref<8x128xf32, #tpu.memory_space<vmem>>) attributes {dimension_semantics = [#tpu.dimension_semantics<parallel>, #tpu.dimension_semantics<arbitrary>], iteration_bounds = array<i64: 1, 1>, scalar_prefetch = 0 : i64, scratch_operands = 1 : i64, tpu.core_type = #tpu.core_type<tc>, window_params = [{transform_indices = @transform_0, window_bounds = array<i64: 16, 128>}, {transform_indices = @transform_1, window_bounds = array<i64: 1, 128>}, {pipeline_mode = #tpu.pipeline_mode<synchronous>, transform_indices = @transform_2, window_bounds = array<i64: 16, 1>}, {pipeline_mode = #tpu.pipeline_mode<synchronous>, transform_indices = @transform_3, window_bounds = array<i64: 16, 16>}, {transform_indices = @transform_4, window_bounds = array<i64: 1, 8, 16>}]} {
    %c0_i32 = arith.constant 0 : i32
    %0 = arith.cmpi eq, %arg1, %c0_i32 : i32
    %1 = arith.extui %0 : i1 to i32
    %c0_i32_0 = arith.constant 0 : i32
    %2 = arith.cmpi ne, %1, %c0_i32_0 : i32
    scf.if %2 {
      %55 = tpu.iota {dimensions = array<i32: 0>} : vector<8x128xi32>
      %c0_i32_29 = arith.constant 0 : i32
      %56 = vector.broadcast %c0_i32_29 : i32 to vector<8x128xi32>
      %57 = arith.cmpi eq, %55, %56 : vector<8x128xi32>
      %cst_30 = arith.constant 1.000000e+00 : f32
      %cst_31 = arith.constant 0.000000e+00 : f32
      %58 = vector.broadcast %cst_30 : f32 to vector<8x128xf32>
      %59 = vector.broadcast %cst_31 : f32 to vector<8x128xf32>
      %60 = arith.select %57, %58, %59 : vector<8x128xi1>, vector<8x128xf32>
      %c0_32 = arith.constant 0 : index
      %c0_33 = arith.constant 0 : index
      %61 = vector.load %arg7[%c0_32, %c0_33] : memref<8x128xf32, #tpu.memory_space<vmem>>, vector<8x128xf32>
      tpu.vector_store %arg7[%c0_32, %c0_33], %60 {strides = array<i32>} : memref<8x128xf32, #tpu.memory_space<vmem>>, vector<8x128xf32>,
      %cst_34 = arith.constant 0.000000e+00 : f32
      %62 = vector.broadcast %cst_34 : f32 to vector<1x8x16xf32>
      %c0_35 = arith.constant 0 : index
      %c0_36 = arith.constant 0 : index
      %c0_37 = arith.constant 0 : index
      %63 = vector.load %arg6[%c0_35, %c0_36, %c0_37] : memref<1x8x16xf32, #tpu.memory_space<vmem>>, vector<1x8x16xf32>
      tpu.vector_store %arg6[%c0_35, %c0_36, %c0_37], %62 {strides = array<i32>} : memref<1x8x16xf32, #tpu.memory_space<vmem>>, vector<1x8x16xf32>,
    } else {
    }
    %c0 = arith.constant 0 : index
    %c0_1 = arith.constant 0 : index
    %3 = vector.load %arg2[%c0, %c0_1] : memref<16x128xf32, #tpu.memory_space<vmem>>, vector<16x128xf32>
    %c0_2 = arith.constant 0 : index
    %c0_3 = arith.constant 0 : index
    %4 = vector.load %arg3[%c0_2, %c0_3] : memref<1x128xi32, #tpu.memory_space<vmem>>, vector<1x128xi32>
    %5 = math.exp %3 : vector<16x128xf32>
    %cst = arith.constant dense<0.000000e+00> : vector<128xf32>
    %6 = vector.multi_reduction <add>, %5, %cst [0] : vector<16x128xf32> to vector<128xf32>
    %7 = vector.shape_cast %6 : vector<128xf32> to vector<1x128xf32>
    %cst_4 = arith.constant 1.600000e+01 : f32
    %8 = vector.broadcast %cst_4 : f32 to vector<1x128xf32>
    %9 = arith.addf %7, %8 : vector<1x128xf32>
    %cst_5 = arith.constant dense<0xFF800000> : vector<128xf32>
    %10 = vector.multi_reduction <maximumf>, %5, %cst_5 [0] : vector<16x128xf32> to vector<128xf32>
    %11 = vector.shape_cast %10 : vector<128xf32> to vector<1x128xf32>
    %cst_6 = arith.constant 1.000000e+00 : f32
    %12 = vector.broadcast %cst_6 : f32 to vector<1x128xf32>
    %13 = arith.addf %11, %12 : vector<1x128xf32>
    %14 = arith.divf %13, %9 : vector<1x128xf32>
    %15 = tpu.iota {dimensions = array<i32: 0>} : vector<16x128xi32>
    %16 = vector.broadcast %11 : vector<1x128xf32> to vector<16x128xf32>
    %17 = arith.cmpf oeq, %5, %16 : vector<16x128xf32>
    %c16_i32 = arith.constant 16 : i32
    %18 = vector.broadcast %c16_i32 : i32 to vector<16x128xi32>
    %19 = arith.select %17, %15, %18 : vector<16x128xi1>, vector<16x128xi32>
    %cst_7 = arith.constant dense<2147483647> : vector<128xi32>
    %20 = vector.multi_reduction <minsi>, %19, %cst_7 [0] : vector<16x128xi32> to vector<128xi32>
    %21 = vector.shape_cast %20 : vector<128xi32> to vector<1x128xi32>
    %22 = arith.cmpi eq, %21, %4 : vector<1x128xi32>
    %23 = arith.extui %22 : vector<1x128xi1> to vector<1x128xi32>
    %24 = arith.sitofp %23 : vector<1x128xi32> to vector<1x128xf32>
    %c1_i32 = arith.constant 1 : i32
    %25 = arith.muli %arg0, %c1_i32 : i32
    %26 = arith.addi %25, %arg1 : i32
    %c128_i32 = arith.constant 128 : i32
    %27 = arith.muli %26, %c128_i32 : i32
    %28 = tpu.iota {dimensions = array<i32: 1>} : vector<1x128xi32>
    %29 = vector.broadcast %27 : i32 to vector<1x128xi32>
    %30 = arith.addi %29, %28 : vector<1x128xi32>
    %c128_i32_8 = arith.constant 128 : i32
    %31 = vector.broadcast %c128_i32_8 : i32 to vector<1x128xi32>
    %32 = arith.cmpi slt, %30, %31 : vector<1x128xi32>
    %cst_9 = arith.constant 0.000000e+00 : f32
    %33 = vector.broadcast %cst_9 : f32 to vector<1x128xf32>
    %34 = arith.cmpf ogt, %14, %33 : vector<1x128xf32>
    %35 = arith.andi %32, %34 : vector<1x128xi1>
    %cst_10 = arith.constant 0.000000e+00 : f32
    %36 = vector.broadcast %cst_10 : f32 to vector<1x128xf32>
    %37 = arith.select %35, %14, %36 : vector<1x128xi1>, vector<1x128xf32>
    %c0_11 = arith.constant 0 : index
    %c0_12 = arith.constant 0 : index
    %38 = vector.load %arg4[%c0_11, %c0_12] : memref<16x1xf32, #tpu.memory_space<vmem>>, vector<16x1xf32>
    %39 = vector.broadcast %37 : vector<1x128xf32> to vector<16x128xf32>
    %40 = vector.broadcast %38 : vector<16x1xf32> to vector<16x128xf32>
    %41 = arith.cmpf ogt, %39, %40 : vector<16x128xf32>
    %cst_13 = arith.constant 1.000000e+00 : f32
    %cst_14 = arith.constant 0.000000e+00 : f32
    %42 = vector.broadcast %cst_13 : f32 to vector<16x128xf32>
    %43 = vector.broadcast %cst_14 : f32 to vector<16x128xf32>
    %44 = arith.select %41, %42, %43 : vector<16x128xi1>, vector<16x128xf32>
    %c1 = arith.constant 1 : index
    %c0_15 = arith.constant 0 : index
    %45 = vector.load %arg7[%c1, %c0_15] : memref<8x128xf32, #tpu.memory_space<vmem>>, vector<1x128xf32>
    tpu.vector_store %arg7[%c1, %c0_15], %24 {strides = array<i32>} : memref<8x128xf32, #tpu.memory_space<vmem>>, vector<1x128xf32>,
    %c2 = arith.constant 2 : index
    %c0_16 = arith.constant 0 : index
    %46 = vector.load %arg7[%c2, %c0_16] : memref<8x128xf32, #tpu.memory_space<vmem>>, vector<1x128xf32>
    tpu.vector_store %arg7[%c2, %c0_16], %37 {strides = array<i32>} : memref<8x128xf32, #tpu.memory_space<vmem>>, vector<1x128xf32>,
    %c0_17 = arith.constant 0 : index
    %c0_18 = arith.constant 0 : index
    %47 = vector.load %arg7[%c0_17, %c0_18] : memref<8x128xf32, #tpu.memory_space<vmem>>, vector<8x128xf32>
    %cst_19 = arith.constant dense<0.000000e+00> : vector<8x16xf32>
    %48 = tpu.matmul %47, %44, %cst_19 {dimension_numbers = #tpu.dot_dimension_numbers<[1], [1], [0], [0], [0, 0, 1, 0], [], []>} : vector<8x128xf32>, vector<16x128xf32>, vector<8x16xf32> -> vector<8x16xf32>
    %c0_20 = arith.constant 0 : index
    %c0_21 = arith.constant 0 : index
    %49 = vector.load %arg5[%c0_20, %c0_21] : memref<16x16xf32, #tpu.memory_space<vmem>>, vector<16x16xf32>
    %cst_22 = arith.constant dense<0.000000e+00> : vector<8x16xf32>
    %50 = tpu.matmul %48, %49, %cst_22 {dimension_numbers = #tpu.dot_dimension_numbers<[1], [0], [0], [1], [0, 0, 1, 1], [], []>} : vector<8x16xf32>, vector<16x16xf32>, vector<8x16xf32> -> vector<8x16xf32>
    %c0_23 = arith.constant 0 : index
    %c0_24 = arith.constant 0 : index
    %c0_25 = arith.constant 0 : index
    %51 = vector.load %arg6[%c0_23, %c0_24, %c0_25] : memref<1x8x16xf32, #tpu.memory_space<vmem>>, vector<1x8x16xf32>
    %52 = vector.shape_cast %50 : vector<8x16xf32> to vector<1x8x16xf32>
    %53 = arith.addf %51, %52 : vector<1x8x16xf32>
    %c0_26 = arith.constant 0 : index
    %c0_27 = arith.constant 0 : index
    %c0_28 = arith.constant 0 : index
    %54 = vector.load %arg6[%c0_26, %c0_27, %c0_28] : memref<1x8x16xf32, #tpu.memory_space<vmem>>, vector<1x8x16xf32>
    tpu.vector_store %arg6[%c0_26, %c0_27, %c0_28], %53 {strides = array<i32>} : memref<1x8x16xf32, #tpu.memory_space<vmem>>, vector<1x8x16xf32>,
    return
  }
  func.func @transform_0(%arg0: i32, %arg1: i32) -> (i32, i32) {
    %c1_i32 = arith.constant 1 : i32
    %0 = arith.muli %arg0, %c1_i32 : i32
    %1 = arith.addi %0, %arg1 : i32
    %c0_i32 = arith.constant 0 : i32
    %c0_i32_0 = arith.constant 0 : i32
    return %c0_i32, %1 : i32, i32
  }
  func.func @transform_1(%arg0: i32, %arg1: i32) -> (i32, i32) {
    %c1_i32 = arith.constant 1 : i32
    %0 = arith.muli %arg0, %c1_i32 : i32
    %1 = arith.addi %0, %arg1 : i32
    %c0_i32 = arith.constant 0 : i32
    %c0_i32_0 = arith.constant 0 : i32
    return %c0_i32, %1 : i32, i32
  }
  func.func @transform_2(%arg0: i32, %arg1: i32) -> (i32, i32) {
    %c0_i32 = arith.constant 0 : i32
    %c0_i32_0 = arith.constant 0 : i32
    %c0_i32_1 = arith.constant 0 : i32
    return %c0_i32, %c0_i32_0 : i32, i32
  }
  func.func @transform_3(%arg0: i32, %arg1: i32) -> (i32, i32) {
    %c0_i32 = arith.constant 0 : i32
    %c0_i32_0 = arith.constant 0 : i32
    %c0_i32_1 = arith.constant 0 : i32
    return %c0_i32, %c0_i32_0 : i32, i32
  }
  func.func @transform_4(%arg0: i32, %arg1: i32) -> (i32, i32, i32) {
    %c0_i32 = arith.constant 0 : i32
    %c0_i32_0 = arith.constant 0 : i32
    %c0_i32_1 = arith.constant 0 : i32
    return %arg0, %c0_i32, %c0_i32_0 : i32, i32, i32
  }
}

</mosaic_0001>

<bundles_post_ra>
// kernel: tpu_custom_call.1
= control target key start
LH: loop header
LB: loop body
LE: loop exit
PB: predicated region body
PF: predicated region fallthrough
CT: control target
= control target key end

     0   :  { %9 = vsyncpa [#allocation4], 0  ;;  %s468_s0 = inlined_call_operand.vmem [shape: f32[16,128], index: 0, kind: input, shape index: {}]   ;;  %s469_s1 = inlined_call_operand.vmem [shape: s32[1,128], index: 1, kind: input, shape index: {}]   ;;  %s470_s2 = inlined_call_operand.vmem [shape: f32[16,1], index: 2, kind: input, shape index: {}]   ;;  %s471_s3 = inlined_call_operand.hbm [shape: f32[16,16], index: 3, kind: input, shape index: {}]   ;;  %s472_s4 = inlined_call_operand.hbm [shape: f32[1,8,16], index: 4, kind: output, shape index: {}]  }
   0x1   :  { %10 = vsyncpa [#allocation5], 0  ;;  %s405_s15 = smov [#allocation3]  }
   0x2   :  { %s33_s16 = sshll.u32 %s405_s15, 4  ;;  %s34_s16 = int_to_ptr.vmem [resolvable:$true] %s33_s16 }
   0x3   :  { %s369_s17 = scalar_lea.vmem %s34_s16, 256  ;;  %p374_p1 = scmp.lt.s32.totalorder %s34_s16, %s34_s16 }
   0x4   :  { %p370_p0 = scmp.ne.s32.totalorder %s34_s16, %s369_s17  ;;  %p375_p2 = scmp.lt.s32.totalorder %s369_s17, %s369_s17 }
   0x6   :  { %p376_p3 = por %p375_p2, %p374_p1 }
   0x8   :  { %p377_p4 = pnand %p376_p3, %p370_p0 }
   0xa   :  { %380 = shalt.err (!%p377_p4)
}
   0xb   :  { %s406_s18 = smov 128   ;;  %s407_s19 = smov 8  }
   0xc   :  { %39 = dma.hbm_to_vmem [thread:$0]  %s471_s3, 256, %s34_s16, [#allocation4], %s406_s18, %s406_s18, %s407_s19  }
   0xd   :  { %401 = dma.done.wait [#allocation4], 256  }
   0xe   :  { %402 = vsyncadd [#allocation4], 4294967040  ;;  %v67_v0 = vlaneseq  ;;  %v408_v1 = vmov 0   ;;  %v409_v2 = vmov 0.0   ;;  %v131_v5 = vld [vmem:[%s470_s2 + $0x8] sm:$0xff]  ;;  %v74_v6 = vld [vmem:[%s468_s0] sm:$0xff] }
   0xf   :  { %354 = vset.pattern.permute.xlu0 %v408_v1  ;;  %332 = vmatprep.subr.mxu0 %v409_v2  ;;  %v75_v7 = vld [vmem:[%s468_s0 + $0x8] sm:$0xff]  ;;  %v77_v8 = vmul.f32 1.442695, %v74_v6  ;;  %v130_v9 = vld [vmem:[%s470_s2] sm:$0xff]  ;;  %vm410_vm1 = vmmov 0   ;;  %v220_v11 = vld [vmem:[#allocation3 + $0x8] sm:$0xff] }
  0x10   :  { %v68_v3 = vshrl.u32 %v67_v0, 7  ;;  %339 = vmatprep.subr.mxu1 %v409_v2  ;;  %139 = vperm.xlu0 %354, %v131_v5   ;;  %v79_v10 = vmul.f32 1.442695, %v75_v7  ;;  %v76_v39 = vld [vmem:[%s469_s1] sm:$0x1]  ;;  %v411_v46 = vmov 1.0  }
  0x11   :  { %355 = vpow2.f32 %v77_v8  ;;  %336 = vmatprep.mubr.msk.f32.mxu0 %vm410_vm1, %v409_v2  ;;  %343 = vmatprep.mubr.msk.f32.mxu1 %vm410_vm1, %v409_v2  ;;  %v219_v49 = vld [vmem:[#allocation3] sm:$0xff]  ;;  %vm72_vm12 = vcmask 130048   ;;  %s412_s1 = smov [#allocation6]  }
  0x12   :  { %vm69_vm0 = vcmp.eq.s32.totalorder %v68_v3, 0  ;;  %357 = vpow2.f32 %v79_v10  ;;  %340 = vmatpush3.msra.mxu1 %v220_v11  ;;  %v101_v26 = vadd.s32 8, %v68_v3  ;;  %73 = vst.msk [vmem:[#allocation6] sm:$0xff] %vm72_vm12, %v409_v2  ;;  %s304_s29 = sshll.u32 %s412_s1, 4  ;;  %s305_s29 = int_to_ptr.vmem [resolvable:$true] %s304_s29 }
  0x13   :  { %v70_v4 = vsel %vm69_vm0, 1.0, %v409_v2  ;;  %341 = vmatprep.subr.mxu1 %v409_v2  ;;  %s381_s30 = scalar_lea.vmem %s305_s29, 128  ;;  %p386_p6 = scmp.lt.s32.totalorder %s305_s29, %s305_s29 }
  0x14   :  { %71 = vst [vmem:[#allocation2] sm:$0xff] %v70_v4  ;;  %134 = vperm.xlu0 %354, %v130_v9   ;;  %342 = vmatpush3.msra.mxu1 %v219_v49  ;;  %p382_p5 = scmp.ne.s32.totalorder %s305_s29, %s381_s30  ;;  %p387_p7 = scmp.lt.s32.totalorder %s381_s30, %s381_s30 }
  0x16   :  { %p388_p8 = por %p387_p7, %p386_p6 }
  0x18   :  { %p389_p9 = pnand %p388_p8, %p382_p5 }
  0x19   :  { %v295_v52 = vld [vmem:[#allocation6] sm:$0xff] }
  0x1e   :  { %v356_v12 = vpop.eup %355 }
  0x1f   :  { %v358_v13 = vpop.eup %357 }
  0x20   :  { %v81_v14 = vadd.f32 %v358_v13, %v356_v12  ;;  %v89_v15 = vmax.f32 %v356_v12, %v358_v13 }
  0x22   :  { %v82_v16 = vrot.slane %v81_v14, 4  ;;  %v90_v17 = vrot.slane %v89_v15, 4 }
  0x24   :  { %v83_v18 = vadd.f32 %v82_v16, %v81_v14  ;;  %v91_v19 = vmax.f32 %v89_v15, %v90_v17 }
  0x26   :  { %v84_v20 = vrot.slane %v83_v18, 2  ;;  %v92_v21 = vrot.slane %v91_v19, 2 }
  0x28   :  { %v85_v22 = vadd.f32 %v84_v20, %v83_v18  ;;  %v93_v23 = vmax.f32 %v91_v19, %v92_v21 }
  0x2a   :  { %v86_v24 = vrot.slane %v85_v22, 1  ;;  %v94_v25 = vrot.slane %v93_v23, 1 }
  0x2c   :  { %v87_v27 = vadd.f32 %v86_v24, %v85_v22  ;;  %v95_v28 = vmax.f32 %v93_v23, %v94_v25 }
  0x2e   :  { %v88_v29 = vadd.f32 16.0, %v87_v27  ;;  %vm102_vm2 = vcmp.eq.f32.partialorder %v356_v12, %v95_v28  ;;  %vm103_vm3 = vcmp.eq.f32.partialorder %v358_v13, %v95_v28  ;;  %v96_v37 = vadd.f32 1.0, %v95_v28 }
  0x2f   :  { %v104_v30 = vsel %vm102_vm2, %v68_v3, 16  ;;  %v105_v31 = vsel %vm103_vm3, %v101_v26, 16 }
  0x30   :  { %359 = vrcp.f32 %v88_v29  ;;  %vm106_vm4 = vcmp.lt.s32.totalorder %v104_v30, %v105_v31 }
  0x31   :  { %v107_v32 = vsel %vm106_vm4, %v104_v30, %v105_v31 }
  0x32   :  { %v108_v33 = vrot.slane %v107_v32, 4 }
  0x34   :  { %vm109_vm5 = vcmp.lt.s32.totalorder %v107_v32, %v108_v33 }
  0x35   :  { %v110_v34 = vsel %vm109_vm5, %v107_v32, %v108_v33 }
  0x36   :  { %v111_v35 = vrot.slane %v110_v34, 2 }
  0x38   :  { %vm112_vm6 = vcmp.lt.s32.totalorder %v110_v34, %v111_v35 }
  0x39   :  { %v113_v36 = vsel %vm112_vm6, %v110_v34, %v111_v35 }
  0x3a   :  { %v114_v38 = vrot.slane %v113_v36, 1 }
  0x3c   :  { %vm115_vm7 = vcmp.lt.s32.totalorder %v113_v36, %v114_v38 }
  0x3d   :  { %v360_v40 = vpop.eup %359  ;;  %v116_v41 = vsel %vm115_vm7, %v113_v36, %v114_v38 }
  0x3e   :  { %v98_v42 = vmul.f32 %v360_v40, %v96_v37  ;;  %vm117_vm8 = vcmp.eq.s32.totalorder %v116_v41, %v76_v39 }
  0x3f   :  { %v322_v43 = vsel %vm117_vm8, 1.0, %v409_v2 }
  0x40   :  { %vm127_vm9 = vcmp.gt.f32.partialorder %v98_v42, 0.0  ;;  %146 = vst [vmem:[#allocation2 + $0x1] sm:$0x1] %v322_v43 }
  0x41   :  { %v129_v44 = vsel %vm127_vm9, %v98_v42, 0.0 }
  0x42   :  { %147 = vst [vmem:[#allocation2 + $0x2] sm:$0x1] %v129_v44 }
  0x49   :  { %v148_v48 = vld [vmem:[#allocation2] sm:$0xff] }
  0x8b   :  { %v140_v45 = vpop.permute.xlu0 %139 }
  0x8c   :  { %vm143_vm10 = vcmp.gt.f32.partialorder %v129_v44, %v140_v45 }
  0x8d   :  { %333 = vmatpush3.xpose.msk.msra.mxu0 %vm143_vm10, %v411_v46 }
  0x8e   :  { %334 = vmatprep.subr.mxu0 %v409_v2 }
  0x8f   :  { %v135_v47 = vpop.permute.xlu0 %134 }
  0x90   :  { %vm142_vm11 = vcmp.gt.f32.partialorder %v129_v44, %v135_v47 }
  0x91   :  { %335 = vmatpush3.xpose.msk.msra.mxu0 %vm142_vm11, %v411_v46 }
  0x94   :  { %337 = vmatmul.mubr.f32.vlgmr.msra.gmra.mxu0 %v148_v48 }
 0x154   :  { %v215_v50 = vpop.f32.mrf.mxu0 }
 0x155   :  { %344 = vmatmul.mubr.msk.f32.vlgmr.msra.gmra.mxu1 %vm72_vm12, %v215_v50 }
 0x156   :  { %v338_v51 = vpop.f32.mrf.mxu0 }
 0x215   :  { %v291_v53 = vpop.f32.mrf.mxu1 }
 0x216   :  { %v296_v54 = vadd.f32 %v295_v52, %v291_v53 }
 0x217   :  { %v345_v55 = vpop.f32.mrf.mxu1 }
 0x218   :  { %297 = vst.msk [vmem:[#allocation6] sm:$0xff] %vm72_vm12, %v296_v54 }
 0x219   :  { %392 = shalt.err (!%p389_p9)
}
 0x21a   :  { %307 = dma.vmem_to_hbm [thread:$0]  %s305_s29, 128, %s472_s4, [#allocation5]  }
 0x21b   :  { %403 = dma.done.wait [#allocation5], 128  }
 0x21c   :  { %404 = vsyncadd [#allocation5], 4294967168 }
 0x21d   :  { %311 = vsyncpa [#allocation4], 1 }
 0x21e   :  { %312 = vsyncpa [#allocation5], 1 }

</bundles_post_ra>
